<compile_context>
chip_gen: v7x
topology: tpu7x:2x2x1
jax: 0.10.0
libtpu: 0.0.40
codegen_flags: <defaults>
</compile_context>

<pallas_src>
import functools

import jax
import jax.numpy as jnp
from jax.experimental import pallas as pl
from jax.experimental.pallas import tpu as pltpu


def _round_up(x, m):
    return ((x + m - 1) // m) * m


# ----------------------------------------------------------------------------
# Kernel: 3 dense matmuls + 2 ReLUs + sigmoid, everything resident in VMEM.
# All biases and the branch-sum are folded into the packed weights.
# ----------------------------------------------------------------------------
def mmm_sum_kernel(x_ref, w1_ref, w2_ref, wclf_ref, out_ref):
    # Layer 1: bias folded via the ones column of x; column h1_tot of w1 is a
    # carrier that re-emits a 1 into h1 (ReLU-stable).
    h1 = jnp.maximum(
        jnp.dot(x_ref[...], w1_ref[...], preferred_element_type=jnp.float32),
        0.0,
    )
    # Layer 2: b2 rides on the carrier row of w2; column h2_tot of w2 re-emits
    # a 1 into h2 to carry the classifier bias.
    h2 = jnp.maximum(
        jnp.dot(h1, w2_ref[...], preferred_element_type=jnp.float32),
        0.0,
    )
    # Sum-of-branches + classifier + its bias folded into one matmul; wclf and
    # bclf are negated host-side, so this already produces -logits.
    neg_logits = jnp.dot(h2, wclf_ref[...], preferred_element_type=jnp.float32)
    # sigmoid(z) = 1 / (1 + exp(-z)); exp on the EUP slot.
    out_ref[...] = pl.reciprocal(1.0 + jnp.exp(neg_logits), approx=False)


# ----------------------------------------------------------------------------
# One-time host-side packing: block-diagonal fusion + bias folding + padding.
# Call this ONCE at setup; its outputs feed the jitted forward.
# ----------------------------------------------------------------------------
def pack_params(p):
    ge_in, _ = p["wge1"].shape
    cs_in, _ = p["wcs1"].shape
    mt_in, _ = p["wmt1"].shape
    h2_ge = p["wge2"].shape[1]
    h2_cs = p["wcs2"].shape[1]
    h2_mt = p["wmt2"].shape[1]
    out_dim = p["wclf"].shape[1]

    # Sum fusion requires all three branches to end in the same width.
    assert h2_ge == h2_cs == h2_mt == p["wclf"].shape[0], (
        "all SubNet layer lists must end in the same dim for the sum fusion")

    d_tot = ge_in + cs_in + mt_in
    h1_tot = p["wge1"].shape[1] + p["wcs1"].shape[1] + p["wmt1"].shape[1]
    h2_tot = h2_ge + h2_cs + h2_mt

    in_pad = _round_up(d_tot + 1, 128)     # +1 ones column carries layer-1 bias
    h1_pad = _round_up(h1_tot + 1, 128)    # +1 carrier column carries layer-2 bias
    h2_pad = _round_up(h2_tot + 1, 128)    # +1 carrier column carries clf bias
    out_pad = _round_up(max(out_dim, 1), 128)

    # W1: block-diag of layer-1 weights; b1 folded into row d_tot; carrier.
    w1 = jnp.zeros((in_pad, h1_pad), jnp.float32)
    w1 = w1.at[:d_tot, :h1_tot].set(
        jax.scipy.linalg.block_diag(p["wge1"], p["wcs1"], p["wmt1"]))
    b1 = jnp.concatenate([p["bge1"], p["bcs1"], p["bmt1"]], axis=1)
    w1 = w1.at[d_tot, :h1_tot].set(b1[0])
    w1 = w1.at[d_tot, h1_tot].set(1.0)     # -> h1[:, h1_tot] == 1 after ReLU

    # W2: block-diag of layer-2 weights; b2 folded into carrier row h1_tot;
    # second carrier column keeps a 1 alive in h2 for the classifier bias.
    w2 = jnp.zeros((h1_pad, h2_pad), jnp.float32)
    w2 = w2.at[:h1_tot, :h2_tot].set(
        jax.scipy.linalg.block_diag(p["wge2"], p["wcs2"], p["wmt2"]))
    b2 = jnp.concatenate([p["bge2"], p["bcs2"], p["bmt2"]], axis=1)
    w2 = w2.at[h1_tot, :h2_tot].set(b2[0])
    w2 = w2.at[h1_tot, h2_tot].set(1.0)    # -> h2[:, h2_tot] == 1 after ReLU

    # Classifier: (a+b+c) @ Wclf == [a b c] @ [Wclf; Wclf; Wclf]; bias on the
    # carrier row.  Negated so the kernel gets -logits directly.
    wclf = jnp.zeros((h2_pad, out_pad), jnp.float32)
    wclf = wclf.at[:h2_tot, :out_dim].set(
        -jnp.concatenate([p["wclf"], p["wclf"], p["wclf"]], axis=0))
    wclf = wclf.at[h2_tot, :out_dim].set(-p["bclf"][0])

    dims = dict(d_tot=d_tot, in_pad=in_pad, h1_pad=h1_pad,
                h2_pad=h2_pad, out_pad=out_pad, out_dim=out_dim)
    return (w1, w2, wclf), dims


# ----------------------------------------------------------------------------
# Forward: one concatenate to build the padded input, one pallas_call with a
# (possibly trivial) parallel batch grid, slice back to [batch, out_dim].
# ----------------------------------------------------------------------------
def _forward(x_ge, x_cs, x_meta, w1, w2, wclf, *, dims):
    batch = x_ge.shape[0]
    d_tot, in_pad = dims["d_tot"], dims["in_pad"]
    h1_pad, h2_pad = dims["h1_pad"], dims["h2_pad"]
    out_pad, out_dim = dims["out_pad"], dims["out_dim"]

    # Batch tiling: 256-row blocks when the batch is large (fills the 256-row
    # MXU pass on v6e/v7x and lets "parallel" shard across v7x TensorCores);
    # otherwise a single block rounded up to the 8-sublane granule.
    tb = min(256, _round_up(batch, 8))
    b_pad = _round_up(batch, tb)

    # Single lane-dense input slab: [features | 1 (bias carrier) | zeros].
    pieces = [x_ge.astype(jnp.float32), x_cs.astype(jnp.float32),
              x_meta.astype(jnp.float32), jnp.ones((batch, 1), jnp.float32)]
    tail = in_pad - d_tot - 1
    if tail > 0:
        pieces.append(jnp.zeros((batch, tail), jnp.float32))
    x_pad = jnp.concatenate(pieces, axis=1)
    if b_pad != batch:
        x_pad = jnp.concatenate(
            [x_pad, jnp.zeros((b_pad - batch, in_pad), jnp.float32)], axis=0)

    flops = 2 * b_pad * (in_pad * h1_pad + h1_pad * h2_pad + h2_pad * out_pad)
    bytes_accessed = 4 * (b_pad * in_pad + w1.size + w2.size + wclf.size
                          + b_pad * out_pad)

    out_padded = pl.pallas_call(
        mmm_sum_kernel,
        out_shape=jax.ShapeDtypeStruct((b_pad, out_pad), jnp.float32),
        grid=(b_pad // tb,),
        in_specs=[
            pl.BlockSpec((tb, in_pad), lambda i: (i, 0)),
            pl.BlockSpec((in_pad, h1_pad), lambda i: (0, 0)),
            pl.BlockSpec((h1_pad, h2_pad), lambda i: (0, 0)),
            pl.BlockSpec((h2_pad, out_pad), lambda i: (0, 0)),
        ],
        out_specs=pl.BlockSpec((tb, out_pad), lambda i: (i, 0)),
        compiler_params=pltpu.CompilerParams(
            dimension_semantics=("parallel",)),
        cost_estimate=pl.CostEstimate(
            flops=flops,
            transcendentals=b_pad * out_pad,        # exp
            bytes_accessed=bytes_accessed),
    )(x_pad, w1, w2, wclf)

    return out_padded[:batch, :out_dim]


def build_forward(params):
    """Pack weights once; return a jitted forward over raw modality inputs."""
    (w1, w2, wclf), dims = pack_params(params)
    fwd = jax.jit(functools.partial(_forward, dims=dims))

    def forward(x_ge, x_cs, x_meta):
        return fwd(x_ge, x_cs, x_meta, w1, w2, wclf)

    return forward


# ----------------------------------------------------------------------------
# Parameter init (nn.Linear-style, weights stored as [in, out]) + reference.
# ----------------------------------------------------------------------------
def init_params(key, ge_in, cs_in, meta_in, ge_layers, cs_layers, meta_layers,
                out_dim):
    def linear(key, fan_in, fan_out):
        kw, kb = jax.random.split(key)
        bound = 1.0 / jnp.sqrt(fan_in)
        w = jax.random.uniform(kw, (fan_in, fan_out), jnp.float32, -bound, bound)
        b = jax.random.uniform(kb, (1, fan_out), jnp.float32, -bound, bound)
        return w, b

    keys = jax.random.split(key, 7)
    p = {}
    p["wge1"], p["bge1"] = linear(keys[0], ge_in, ge_layers[0])
    p["wge2"], p["bge2"] = linear(keys[1], ge_layers[0], ge_layers[1])
    p["wcs1"], p["bcs1"] = linear(keys[2], cs_in, cs_layers[0])
    p["wcs2"], p["bcs2"] = linear(keys[3], cs_layers[0], cs_layers[1])
    p["wmt1"], p["bmt1"] = linear(keys[4], meta_in, meta_layers[0])
    p["wmt2"], p["bmt2"] = linear(keys[5], meta_layers[0], meta_layers[1])
    p["wclf"], p["bclf"] = linear(keys[6], ge_layers[-1], out_dim)
    return p


def reference_forward(x_ge, x_cs, x_meta, p):
    def mlp(x, w1, b1, w2, b2):
        h = jnp.maximum(x @ w1 + b1, 0.0)
        return jnp.maximum(h @ w2 + b2, 0.0)

    s = (mlp(x_ge, p["wge1"], p["bge1"], p["wge2"], p["bge2"])
         + mlp(x_cs, p["wcs1"], p["bcs1"], p["wcs2"], p["bcs2"])
         + mlp(x_meta, p["wmt1"], p["bmt1"], p["wmt2"], p["bmt2"]))
    logits = s @ p["wclf"] + p["bclf"]
    return jax.nn.sigmoid(logits)


if __name__ == "__main__":
    batch = 8
    ge_in, cs_in, meta_in = 32, 24, 16
    ge_layers = cs_layers = meta_layers = [64, 32]
    out_dim = 8

    key = jax.random.PRNGKey(0)
    k_ge, k_cs, k_meta, k_par = jax.random.split(key, 4)

    x_ge = jax.random.normal(k_ge, (batch, ge_in), jnp.float32)
    x_cs = jax.random.normal(k_cs, (batch, cs_in), jnp.float32)
    x_meta = jax.random.normal(k_meta, (batch, meta_in), jnp.float32)

    params = init_params(k_par, ge_in, cs_in, meta_in,
                         ge_layers, cs_layers, meta_layers, out_dim)

    # Pack once; forward is jitted over the already-packed weights.
    forward = build_forward(params)

    out = jax.block_until_ready(forward(x_ge, x_cs, x_meta))

    ref = reference_forward(x_ge, x_cs, x_meta, params)
    assert out.shape == (batch, out_dim)
    assert jnp.allclose(out, ref, atol=2e-3, rtol=2e-3), "mismatch vs reference"

    print("KERNEL_OK")
</pallas_src>

<mosaic_0001>
module attributes {stable_mosaic.version = 11 : i64} {
  func.func @mmm_sum_kernel(%arg0: i32, %arg1: memref<8x128xf32, #tpu.memory_space<vmem>>, %arg2: memref<128x256xf32, #tpu.memory_space<vmem>>, %arg3: memref<256x128xf32, #tpu.memory_space<vmem>>, %arg4: memref<128x128xf32, #tpu.memory_space<vmem>>, %arg5: memref<8x128xf32, #tpu.memory_space<vmem>>) attributes {dimension_semantics = [#tpu.dimension_semantics<parallel>], iteration_bounds = array<i64: 1>, scalar_prefetch = 0 : i64, scratch_operands = 0 : i64, tpu.core_type = #tpu.core_type<tc>, window_params = [{transform_indices = @transform_0, window_bounds = array<i64: 8, 128>}, {pipeline_mode = #tpu.pipeline_mode<synchronous>, transform_indices = @transform_1, window_bounds = array<i64: 128, 256>}, {pipeline_mode = #tpu.pipeline_mode<synchronous>, transform_indices = @transform_2, window_bounds = array<i64: 256, 128>}, {pipeline_mode = #tpu.pipeline_mode<synchronous>, transform_indices = @transform_3, window_bounds = array<i64: 128, 128>}, {transform_indices = @transform_4, window_bounds = array<i64: 8, 128>}]} {
    %c0 = arith.constant 0 : index
    %c0_0 = arith.constant 0 : index
    %0 = vector.load %arg1[%c0, %c0_0] : memref<8x128xf32, #tpu.memory_space<vmem>>, vector<8x128xf32>
    %c0_1 = arith.constant 0 : index
    %c0_2 = arith.constant 0 : index
    %1 = vector.load %arg2[%c0_1, %c0_2] : memref<128x256xf32, #tpu.memory_space<vmem>>, vector<128x256xf32>
    %cst = arith.constant dense<0.000000e+00> : vector<8x256xf32>
    %2 = tpu.matmul %0, %1, %cst {dimension_numbers = #tpu.dot_dimension_numbers<[1], [0], [0], [1], [0, 0, 1, 1], [], []>} : vector<8x128xf32>, vector<128x256xf32>, vector<8x256xf32> -> vector<8x256xf32>
    %cst_3 = arith.constant 0.000000e+00 : f32
    %3 = vector.broadcast %cst_3 : f32 to vector<8x256xf32>
    %4 = arith.maximumf %2, %3 : vector<8x256xf32>
    %c0_4 = arith.constant 0 : index
    %c0_5 = arith.constant 0 : index
    %5 = vector.load %arg3[%c0_4, %c0_5] : memref<256x128xf32, #tpu.memory_space<vmem>>, vector<256x128xf32>
    %cst_6 = arith.constant dense<0.000000e+00> : vector<8x128xf32>
    %6 = tpu.matmul %4, %5, %cst_6 {dimension_numbers = #tpu.dot_dimension_numbers<[1], [0], [0], [1], [0, 0, 1, 1], [], []>} : vector<8x256xf32>, vector<256x128xf32>, vector<8x128xf32> -> vector<8x128xf32>
    %cst_7 = arith.constant 0.000000e+00 : f32
    %7 = vector.broadcast %cst_7 : f32 to vector<8x128xf32>
    %8 = arith.maximumf %6, %7 : vector<8x128xf32>
    %c0_8 = arith.constant 0 : index
    %c0_9 = arith.constant 0 : index
    %9 = vector.load %arg4[%c0_8, %c0_9] : memref<128x128xf32, #tpu.memory_space<vmem>>, vector<128x128xf32>
    %cst_10 = arith.constant dense<0.000000e+00> : vector<8x128xf32>
    %10 = tpu.matmul %8, %9, %cst_10 {dimension_numbers = #tpu.dot_dimension_numbers<[1], [0], [0], [1], [0, 0, 1, 1], [], []>} : vector<8x128xf32>, vector<128x128xf32>, vector<8x128xf32> -> vector<8x128xf32>
    %11 = math.exp %10 : vector<8x128xf32>
    %cst_11 = arith.constant 1.000000e+00 : f32
    %12 = vector.broadcast %cst_11 : f32 to vector<8x128xf32>
    %13 = arith.addf %12, %11 : vector<8x128xf32>
    %14 = tpu.reciprocal %13 : vector<8x128xf32> -> vector<8x128xf32>
    %c0_12 = arith.constant 0 : index
    %c0_13 = arith.constant 0 : index
    %15 = vector.load %arg5[%c0_12, %c0_13] : memref<8x128xf32, #tpu.memory_space<vmem>>, vector<8x128xf32>
    tpu.vector_store %arg5[%c0_12, %c0_13], %14 {strides = array<i32>} : memref<8x128xf32, #tpu.memory_space<vmem>>, vector<8x128xf32>,
    return
  }
  func.func @transform_0(%arg0: i32) -> (i32, i32) {
    %c0_i32 = arith.constant 0 : i32
    %c0_i32_0 = arith.constant 0 : i32
    return %arg0, %c0_i32 : i32, i32
  }
  func.func @transform_1(%arg0: i32) -> (i32, i32) {
    %c0_i32 = arith.constant 0 : i32
    %c0_i32_0 = arith.constant 0 : i32
    %c0_i32_1 = arith.constant 0 : i32
    return %c0_i32, %c0_i32_0 : i32, i32
  }
  func.func @transform_2(%arg0: i32) -> (i32, i32) {
    %c0_i32 = arith.constant 0 : i32
    %c0_i32_0 = arith.constant 0 : i32
    %c0_i32_1 = arith.constant 0 : i32
    return %c0_i32, %c0_i32_0 : i32, i32
  }
  func.func @transform_3(%arg0: i32) -> (i32, i32) {
    %c0_i32 = arith.constant 0 : i32
    %c0_i32_0 = arith.constant 0 : i32
    %c0_i32_1 = arith.constant 0 : i32
    return %c0_i32, %c0_i32_0 : i32, i32
  }
  func.func @transform_4(%arg0: i32) -> (i32, i32) {
    %c0_i32 = arith.constant 0 : i32
    %c0_i32_0 = arith.constant 0 : i32
    return %arg0, %c0_i32 : i32, i32
  }
}

</mosaic_0001>

<bundles_post_ra>
// kernel: _forward.1
= control target key start
LH: loop header
LB: loop body
LE: loop exit
PB: predicated region body
PF: predicated region fallthrough
CT: control target
= control target key end

     0   :  { %9 = vsyncpa [#allocation3], 0  ;;  %s754_s0 = inlined_call_operand.vmem [shape: f32[8,128], index: 0, kind: input, shape index: {}]   ;;  %s755_s1 = inlined_call_operand.hbm [shape: f32[128,256], index: 1, kind: input, shape index: {}]   ;;  %s756_s2 = inlined_call_operand.hbm [shape: f32[256,128], index: 2, kind: input, shape index: {}]   ;;  %s757_s3 = inlined_call_operand.hbm [shape: f32[128,128], index: 3, kind: input, shape index: {}]   ;;  %s758_s4 = inlined_call_operand.hbm [shape: f32[8,128], index: 4, kind: output, shape index: {}]  }
   0x1   :  { %10 = vsyncpa [#allocation6], 0 }
   0x2   :  { %11 = vsyncpa [#allocation4], 0  ;;  %s659_s15 = smov [#allocation5]   ;;  %s565_s19 = scalar_lea.hbm %s756_s2, 4096 }
   0x3   :  { %s31_s16 = sshll.u32 %s659_s15, 4  ;;  %p566_p0 = scmp.ne.s32.totalorder %s756_s2, %s565_s19  ;;  %s32_s16 = int_to_ptr.vmem [resolvable:$true] %s31_s16 }
   0x4   :  { %p569_p1 = scmp.lt.u32.totalorder %s565_s19, %s756_s2 }
   0x6   :  { %p571_p2 = pnand %p569_p1, %p566_p0 }
   0x8   :  { %574 = shalt.err (!%p571_p2)
}
   0x9   :  { %s575_s24 = scalar_lea.vmem %s32_s16, 4096  ;;  %p580_p4 = scmp.lt.s32.totalorder %s32_s16, %s32_s16 }
   0xa   :  { %p576_p3 = scmp.ne.s32.totalorder %s32_s16, %s575_s24  ;;  %p581_p5 = scmp.lt.s32.totalorder %s575_s24, %s575_s24 }
   0xc   :  { %p582_p6 = por %p581_p5, %p580_p4 }
   0xe   :  { %p583_p7 = pnand %p582_p6, %p576_p3 }
  0x10   :  { %586 = shalt.err (!%p583_p7)
}
  0x11   :  { %s660_s25 = smov 128   ;;  %s661_s26 = smov 8  }
  0x12   :  { %37 = dma.hbm_to_vmem [thread:$0]  %s756_s2, 4096, %s32_s16, [#allocation6], %s660_s25, %s660_s25, %s661_s26  }
  0x13   :  { %s662_s29 = smov [#allocation2]   ;;  %s587_s7 = scalar_lea.hbm %s755_s1, 4096 }
  0x14   :  { %s19_s30 = sshll.u32 %s662_s29, 4  ;;  %p588_p8 = scmp.ne.s32.totalorder %s755_s1, %s587_s7  ;;  %s20_s30 = int_to_ptr.vmem [resolvable:$true] %s19_s30 }
  0x15   :  { %p591_p9 = scmp.lt.u32.totalorder %s587_s7, %s755_s1 }
  0x17   :  { %p593_p10 = pnand %p591_p9, %p588_p8 }
  0x19   :  { %596 = shalt.err (!%p593_p10)
}
  0x1a   :  { %s597_s12 = scalar_lea.vmem %s20_s30, 4096  ;;  %p602_p12 = scmp.lt.s32.totalorder %s20_s30, %s20_s30 }
  0x1b   :  { %p598_p11 = scmp.ne.s32.totalorder %s20_s30, %s597_s12  ;;  %p603_p13 = scmp.lt.s32.totalorder %s597_s12, %s597_s12 }
  0x1d   :  { %p604_p0 = por %p603_p13, %p602_p12 }
  0x1f   :  { %p605_p1 = pnand %p604_p0, %p598_p11 }
  0x21   :  { %608 = shalt.err (!%p605_p1)
}
  0x22   :  { %s663_s2 = smov 256   ;;  %s664_s13 = smov 16  }
  0x23   :  { %25 = dma.hbm_to_vmem [thread:$0]  %s755_s1, 4096, %s20_s30, [#allocation3], %s663_s2, %s663_s2, %s664_s13  }
  0x24   :  { %s665_s16 = smov [#allocation7]   ;;  %s609_s20 = scalar_lea.hbm %s757_s3, 2048 }
  0x25   :  { %s43_s17 = sshll.u32 %s665_s16, 4  ;;  %p610_p2 = scmp.ne.s32.totalorder %s757_s3, %s609_s20  ;;  %s44_s17 = int_to_ptr.vmem [resolvable:$true] %s43_s17 }
  0x26   :  { %p613_p3 = scmp.lt.u32.totalorder %s609_s20, %s757_s3 }
  0x28   :  { %p615_p4 = pnand %p613_p3, %p610_p2 }
  0x2a   :  { %618 = shalt.err (!%p615_p4)
}
  0x2b   :  { %s619_s27 = scalar_lea.vmem %s44_s17, 2048  ;;  %p624_p6 = scmp.lt.s32.totalorder %s44_s17, %s44_s17 }
  0x2c   :  { %p620_p5 = scmp.ne.s32.totalorder %s44_s17, %s619_s27  ;;  %p625_p7 = scmp.lt.s32.totalorder %s619_s27, %s619_s27 }
  0x2e   :  { %p626_p8 = por %p625_p7, %p624_p6 }
  0x30   :  { %p627_p9 = pnand %p626_p8, %p620_p5 }
  0x32   :  { %630 = shalt.err (!%p627_p9)
}
  0x33   :  { %49 = dma.hbm_to_vmem [thread:$0]  %s757_s3, 2048, %s44_s17, [#allocation6], %s660_s25, %s660_s25, %s661_s26  }
  0x34   :  { %653 = dma.done.wait [#allocation3], 4096  }
  0x35   :  { %654 = vsyncadd [#allocation3], 4294963200 }
  0x36   :  { %655 = dma.done.wait [#allocation6], 6144  }
  0x37   :  { %656 = vsyncadd [#allocation6], 4294961152  ;;  %v666_v0 = vmov 0.0   ;;  %v61_v1 = vld [vmem:[#allocation2 + $0x8] sm:$0xff]  ;;  %v63_v2 = vld [vmem:[#allocation2 + $0x18] sm:$0xff]  ;;  %vm668_vm0 = vmmov 0  }
  0x38   :  { %156 = vmatprep.mubr.f32.mxu0 %v666_v0  ;;  %v60_v3 = vld [vmem:[#allocation2] sm:$0xff]  ;;  %v462_v4 = vpack.c.bf16 %v63_v2, %v61_v1  ;;  %v62_v5 = vld [vmem:[#allocation2 + $0x10] sm:$0xff]  ;;  %v65_v6 = vld [vmem:[#allocation2 + $0x28] sm:$0xff] }
  0x39   :  { %v67_v7 = vld [vmem:[#allocation2 + $0x38] sm:$0xff]  ;;  %v464_v8 = vpack.c.bf16 %v62_v5, %v60_v3  ;;  %v64_v10 = vld [vmem:[#allocation2 + $0x20] sm:$0xff]  ;;  %v66_v11 = vld [vmem:[#allocation2 + $0x30] sm:$0xff] }
  0x3a   :  { %v466_v9 = vpack.c.bf16 %v67_v7, %v65_v6  ;;  %v69_v12 = vld [vmem:[#allocation2 + $0x48] sm:$0xff]  ;;  %463 = vmatprep.subr.bf16.mxu0 %v462_v4  ;;  %v71_v13 = vld [vmem:[#allocation2 + $0x58] sm:$0xff]  ;;  %v468_v14 = vpack.c.bf16 %v66_v11, %v64_v10  ;;  %v68_v16 = vld [vmem:[#allocation2 + $0x40] sm:$0xff] }
  0x3b   :  { %465 = vmatpush1.bf16.msra.mxu0 %v464_v8  ;;  %v470_v15 = vpack.c.bf16 %v71_v13, %v69_v12  ;;  %v70_v17 = vld [vmem:[#allocation2 + $0x50] sm:$0xff]  ;;  %v73_v18 = vld [vmem:[#allocation2 + $0x68] sm:$0xff]  ;;  %v75_v19 = vld [vmem:[#allocation2 + $0x78] sm:$0xff] }
  0x3c   :  { %467 = vmatprep.subr.bf16.mxu0 %v466_v9  ;;  %v472_v20 = vpack.c.bf16 %v70_v17, %v68_v16  ;;  %v474_v21 = vpack.c.bf16 %v75_v19, %v73_v18  ;;  %v72_v22 = vld [vmem:[#allocation2 + $0x60] sm:$0xff]  ;;  %v74_v23 = vld [vmem:[#allocation2 + $0x70] sm:$0xff]  ;;  %v77_v24 = vld [vmem:[#allocation2 + $0x88] sm:$0xff] }
  0x3d   :  { %v79_v25 = vld [vmem:[#allocation2 + $0x98] sm:$0xff]  ;;  %v76_v26 = vld [vmem:[#allocation2 + $0x80] sm:$0xff]  ;;  %v78_v27 = vld [vmem:[#allocation2 + $0x90] sm:$0xff]  ;;  %v476_v31 = vpack.c.bf16 %v74_v23, %v72_v22 }
  0x3e   :  { %v181_v28 = vld [vmem:[#allocation5 + $0x80] sm:$0xff]  ;;  %v182_v29 = vld [vmem:[#allocation5 + $0x88] sm:$0xff]  ;;  %v183_v34 = vld [vmem:[#allocation5 + $0x90] sm:$0xff]  ;;  %v478_v36 = vpack.c.bf16 %v79_v25, %v77_v24  ;;  %v480_v46 = vpack.c.bf16 %v78_v27, %v76_v26 }
  0x3f   :  { %469 = vmatpush1.bf16.msra.mxu0 %v468_v14  ;;  %v165_v30 = vld [vmem:[#allocation5] sm:$0xff]  ;;  %v494_v32 = vpack.c.bf16 %v182_v29, %v181_v28  ;;  %v166_v33 = vld [vmem:[#allocation5 + $0x8] sm:$0xff]  ;;  %v184_v35 = vld [vmem:[#allocation5 + $0x98] sm:$0xff] }
  0x40   :  { %471 = vmatprep.subr.bf16.mxu0 %v470_v15  ;;  %v496_v37 = vpack.c.bf16 %v166_v33, %v165_v30  ;;  %v498_v38 = vpack.c.bf16 %v184_v35, %v183_v34  ;;  %v167_v39 = vld [vmem:[#allocation5 + $0x10] sm:$0xff]  ;;  %v168_v40 = vld [vmem:[#allocation5 + $0x18] sm:$0xff]  ;;  %v185_v41 = vld [vmem:[#allocation5 + $0xa0] sm:$0xff] }
  0x41   :  { %v81_v42 = vld [vmem:[#allocation2 + $0xa8] sm:$0xff]  ;;  %v83_v43 = vld [vmem:[#allocation2 + $0xb8] sm:$0xff]  ;;  %495 = vmatprep.subr.bf16.mxu1 %v494_v32  ;;  %v500_v45 = vpack.c.bf16 %v168_v40, %v167_v39  ;;  %v80_v47 = vld [vmem:[#allocation2 + $0xa0] sm:$0xff] }
  0x42   :  { %v186_v44 = vld [vmem:[#allocation5 + $0xa8] sm:$0xff]  ;;  %497 = vmatpush3.bf16.msra.mxu1 %v496_v37  ;;  %v169_v49 = vld [vmem:[#allocation5 + $0x20] sm:$0xff]  ;;  %v482_v51 = vpack.c.bf16 %v83_v43, %v81_v42  ;;  %v82_v52 = vld [vmem:[#allocation2 + $0xb0] sm:$0xff] }
  0x43   :  { %473 = vmatpush1.bf16.msra.mxu0 %v472_v20  ;;  %499 = vmatprep.subr.bf16.mxu1 %v498_v38  ;;  %v502_v48 = vpack.c.bf16 %v186_v44, %v185_v41  ;;  %v170_v50 = vld [vmem:[#allocation5 + $0x28] sm:$0xff]  ;;  %v187_v53 = vld [vmem:[#allocation5 + $0xb0] sm:$0xff]  ;;  %v188_v54 = vld [vmem:[#allocation5 + $0xb8] sm:$0xff]  ;;  %v484_v58 = vpack.c.bf16 %v82_v52, %v80_v47  ;;  %v667_v38 = vmov 0.0|0.0  }
  0x44   :  { %475 = vmatprep.subr.bf16.mxu0 %v474_v21  ;;  %v85_v55 = vld [vmem:[#allocation2 + $0xc8] sm:$0xff]  ;;  %v87_v56 = vld [vmem:[#allocation2 + $0xd8] sm:$0xff]  ;;  %v504_v57 = vpack.c.bf16 %v170_v50, %v169_v49  ;;  %v84_v59 = vld [vmem:[#allocation2 + $0xc0] sm:$0xff]  ;;  %v506_v60 = vpack.c.bf16 %v188_v54, %v187_v53 }
  0x45   :  { %v171_v61 = vld [vmem:[#allocation5 + $0x30] sm:$0xff]  ;;  %v172_v62 = vld [vmem:[#allocation5 + $0x38] sm:$0xff]  ;;  %v486_v63 = vpack.c.bf16 %v87_v56, %v85_v55  ;;  %v189_v2 = vld [vmem:[#allocation5 + $0xc0] sm:$0xff] }
  0x46   :  { %501 = vmatpush3.bf16.msra.mxu1 %v500_v45  ;;  %v86_v1 = vld [vmem:[#allocation2 + $0xd0] sm:$0xff]  ;;  %v190_v3 = vld [vmem:[#allocation5 + $0xc8] sm:$0xff]  ;;  %v91_v5 = vld [vmem:[#allocation2 + $0xf8] sm:$0xff]  ;;  %v508_v6 = vpack.c.bf16 %v172_v62, %v171_v61 }
  0x47   :  { %477 = vmatpush1.bf16.msra.mxu0 %v476_v31  ;;  %503 = vmatprep.subr.bf16.mxu1 %v502_v48  ;;  %v89_v4 = vld [vmem:[#allocation2 + $0xe8] sm:$0xff]  ;;  %v488_v7 = vpack.c.bf16 %v86_v1, %v84_v59  ;;  %v88_v8 = vld [vmem:[#allocation2 + $0xe0] sm:$0xff]  ;;  %v510_v9 = vpack.c.bf16 %v190_v3, %v189_v2  ;;  %v90_v13 = vld [vmem:[#allocation2 + $0xf0] sm:$0xff] }
  0x48   :  { %479 = vmatprep.subr.bf16.mxu0 %v478_v36  ;;  %v173_v10 = vld [vmem:[#allocation5 + $0x40] sm:$0xff]  ;;  %v174_v11 = vld [vmem:[#allocation5 + $0x48] sm:$0xff]  ;;  %v490_v12 = vpack.c.bf16 %v91_v5, %v89_v4  ;;  %v191_v14 = vld [vmem:[#allocation5 + $0xd0] sm:$0xff]  ;;  %v492_v17 = vpack.c.bf16 %v90_v13, %v88_v8 }
  0x49   :  { %v192_v15 = vld [vmem:[#allocation5 + $0xd8] sm:$0xff]  ;;  %v512_v16 = vpack.c.bf16 %v174_v11, %v173_v10  ;;  %v175_v19 = vld [vmem:[#allocation5 + $0x50] sm:$0xff]  ;;  %v193_v21 = vld [vmem:[#allocation5 + $0xe0] sm:$0xff] }
  0x4a   :  { %505 = vmatpush3.bf16.msra.mxu1 %v504_v57  ;;  %v514_v18 = vpack.c.bf16 %v192_v15, %v191_v14  ;;  %v176_v20 = vld [vmem:[#allocation5 + $0x58] sm:$0xff]  ;;  %v194_v22 = vld [vmem:[#allocation5 + $0xe8] sm:$0xff]  ;;  %v59_v24 = vld [vmem:[%s754_s0] sm:$0xff]  ;;  %s669_s0 = smov [#allocation8]  }
  0x4b   :  { %481 = vmatpush1.bf16.msra.mxu0 %v480_v46  ;;  %507 = vmatprep.subr.bf16.mxu1 %v506_v60  ;;  %v516_v23 = vpack.c.bf16 %v176_v20, %v175_v19  ;;  %v518_v25 = vpack.c.bf16 %v194_v22, %v193_v21  ;;  %v177_v26 = vld [vmem:[#allocation5 + $0x60] sm:$0xff]  ;;  %v178_v27 = vld [vmem:[#allocation5 + $0x68] sm:$0xff]  ;;  %v195_v29 = vld [vmem:[#allocation5 + $0xf0] sm:$0xff]  ;;  %s365_s26 = sshll.u32 %s669_s0, 4  ;;  %s366_s26 = int_to_ptr.vmem [resolvable:$true] %s365_s26 }
  0x4c   :  { %483 = vmatprep.subr.bf16.mxu0 %v482_v51  ;;  %v520_v28 = vpack.c.bf16 %v178_v27, %v177_v26  ;;  %v196_v30 = vld [vmem:[#allocation5 + $0xf8] sm:$0xff]  ;;  %v179_v32 = vld [vmem:[#allocation5 + $0x70] sm:$0xff]  ;;  %v268_v35 = vld [vmem:[#allocation7] sm:$0xff]  ;;  %s631_s29 = scalar_lea.vmem %s366_s26, 128  ;;  %p636_p11 = scmp.lt.s32.totalorder %s366_s26, %s366_s26 }
  0x4d   :  { %v522_v31 = vpack.c.bf16 %v196_v30, %v195_v29  ;;  %v180_v33 = vld [vmem:[#allocation5 + $0x78] sm:$0xff]  ;;  %v269_v36 = vld [vmem:[#allocation7 + $0x8] sm:$0xff]  ;;  %v270_v37 = vld [vmem:[#allocation7 + $0x10] sm:$0xff]  ;;  %p632_p10 = scmp.ne.s32.totalorder %s366_s26, %s631_s29  ;;  %p637_p12 = scmp.lt.s32.totalorder %s631_s29, %s631_s29 }
  0x4e   :  { %509 = vmatpush3.bf16.msra.mxu1 %v508_v6  ;;  %v524_v34 = vpack.c.bf16 %v180_v33, %v179_v32  ;;  %v527_v39 = vpack.c.bf16 %v269_v36, %v268_v35  ;;  %v271_v40 = vld [vmem:[#allocation7 + $0x18] sm:$0xff]  ;;  %v272_v42 = vld [vmem:[#allocation7 + $0x20] sm:$0xff]  ;;  %v273_v43 = vld [vmem:[#allocation7 + $0x28] sm:$0xff] }
  0x4f   :  { %485 = vmatpush1.bf16.msra.mxu0 %v484_v58  ;;  %511 = vmatprep.subr.bf16.mxu1 %v510_v9  ;;  %v530_v41 = vpack.c.bf16 %v271_v40, %v270_v37  ;;  %v533_v44 = vpack.c.bf16 %v273_v43, %v272_v42  ;;  %v274_v45 = vld [vmem:[#allocation7 + $0x30] sm:$0xff]  ;;  %v275_v46 = vld [vmem:[#allocation7 + $0x38] sm:$0xff]  ;;  %v276_v48 = vld [vmem:[#allocation7 + $0x40] sm:$0xff]  ;;  %p638_p13 = por %p637_p12, %p636_p11 }
  0x50   :  { %487 = vmatprep.subr.bf16.mxu0 %v486_v63  ;;  %v536_v47 = vpack.c.bf16 %v275_v46, %v274_v45  ;;  %v277_v49 = vld [vmem:[#allocation7 + $0x48] sm:$0xff]  ;;  %v278_v51 = vld [vmem:[#allocation7 + $0x50] sm:$0xff]  ;;  %v279_v52 = vld [vmem:[#allocation7 + $0x58] sm:$0xff] }
  0x51   :  { %v539_v50 = vpack.c.bf16 %v277_v49, %v276_v48  ;;  %v542_v53 = vpack.c.bf16 %v279_v52, %v278_v51  ;;  %v280_v54 = vld [vmem:[#allocation7 + $0x60] sm:$0xff]  ;;  %v281_v55 = vld [vmem:[#allocation7 + $0x68] sm:$0xff]  ;;  %v282_v61 = vld [vmem:[#allocation7 + $0x70] sm:$0xff]  ;;  %p639_p0 = pnand %p638_p13, %p632_p10 }
  0x52   :  { %513 = vmatpush3.bf16.msra.mxu1 %v512_v16  ;;  %v545_v56 = vpack.c.bf16 %v281_v55, %v280_v54  ;;  %v283_v62 = vld [vmem:[#allocation7 + $0x78] sm:$0xff] }
  0x53   :  { %489 = vmatpush1.bf16.msra.mxu0 %v488_v7  ;;  %515 = vmatprep.subr.bf16.mxu1 %v514_v18  ;;  %v548_v63 = vpack.c.bf16 %v283_v62, %v282_v61 }
  0x54   :  { %491 = vmatprep.subr.bf16.mxu0 %v490_v12 }
  0x56   :  { %517 = vmatpush3.bf16.msra.mxu1 %v516_v23 }
  0x57   :  { %493 = vmatpush1.bf16.msra.mxu0 %v492_v17  ;;  %519 = vmatprep.subr.bf16.mxu1 %v518_v25 }
  0x58   :  { %526 = vmatprep.subr.bf16.mxu0 %v667_v38 }
  0x5a   :  { %157 = vmatmul.mubr.f32.vlgmr.msra.gmra.mrb[0].mxu0 %v59_v24  ;;  %521 = vmatpush3.bf16.msra.mxu1 %v520_v28 }
  0x5b   :  { %523 = vmatprep.subr.bf16.mxu1 %v522_v31  ;;  %528 = vmatpush3.bf16.msra.mxu0 %v527_v39 }
  0x5c   :  { %529 = vmatprep.subr.bf16.mxu0 %v667_v38  ;;  %459 = vmatprep.mubr.msk.f32.mxu0 %vm668_vm0, %v666_v0 }
  0x5e   :  { %525 = vmatpush3.bf16.msra.mxu1 %v524_v34 }
  0x5f   :  { %531 = vmatpush3.bf16.msra.mxu0 %v530_v41 }
  0x60   :  { %532 = vmatprep.subr.bf16.mxu0 %v667_v38 }
  0x63   :  { %534 = vmatpush3.bf16.msra.mxu0 %v533_v44 }
  0x64   :  { %535 = vmatprep.subr.bf16.mxu0 %v667_v38 }
  0x67   :  { %537 = vmatpush3.bf16.msra.mxu0 %v536_v47 }
  0x68   :  { %538 = vmatprep.subr.bf16.mxu0 %v667_v38 }
  0x6b   :  { %540 = vmatpush3.bf16.msra.mxu0 %v539_v50 }
  0x6c   :  { %541 = vmatprep.subr.bf16.mxu0 %v667_v38 }
  0x6f   :  { %543 = vmatpush3.bf16.msra.mxu0 %v542_v53 }
  0x70   :  { %544 = vmatprep.subr.bf16.mxu0 %v667_v38 }
  0x73   :  { %546 = vmatpush3.bf16.msra.mxu0 %v545_v56 }
  0x74   :  { %547 = vmatprep.subr.bf16.mxu0 %v667_v38 }
  0x77   :  { %549 = vmatpush3.bf16.msra.mxu0 %v548_v63 }
 0x12d   :  { %v158_v57 = vpop.f32.mrb[0].mxu0 }
 0x12e   :  { %v160_v58 = vpop.f32.mrb[1].mxu0  ;;  %v163_v60 = vmax.f32 %v158_v57, 0.0 }
 0x12f   :  { %v164_v59 = vmax.f32 %v160_v58, 0.0 }
 0x131   :  { %261 = vmatprep.mubr.f32.mxu1 %v164_v59 }
 0x132   :  { %262 = vmatmul.mubr.f32.vlgmr.msra.gmra.mrb[0].mxu1 %v163_v60 }
 0x205   :  { %v407_v1 = vpop.f32.mrb[0].mxu1 }
 0x206   :  { %v408_v2 = vpop.f32.mrb[1].mxu1 }
 0x207   :  { %v409_v3 = vadd.f32 %v408_v2, %v407_v1 }
 0x209   :  { %v267_v4 = vmax.f32 %v409_v3, 0.0 }
 0x20b   :  { %460 = vmatmul.mubr.f32.vlgmr.msra.gmra.mrb[2].mxu0 %v267_v4 }
 0x2de   :  { %v350_v5 = vpop.f32.mrb[2].mxu0 }
 0x2df   :  { %v354_v6 = vmul.f32 1.442695, %v350_v5  ;;  %v461_v7 = vpop.f32.mrb[3].mxu0 }
 0x2e1   :  { %561 = vpow2.f32 %v354_v6 }
 0x2eb   :  { %v562_v8 = vpop.eup %561 }
 0x2ec   :  { %v356_v9 = vadd.f32 1.0, %v562_v8 }
 0x2ee   :  { %563 = vrcp.f32 %v356_v9 }
 0x2f8   :  { %v564_v10 = vpop.eup %563 }
 0x2f9   :  { %358 = vst [vmem:[#allocation8] sm:$0xff] %v564_v10 }
 0x2fa   :  { %642 = shalt.err (!%p639_p0)
}
 0x2fb   :  { %s643_s6 = scalar_lea.hbm %s758_s4, 128 }
 0x2fc   :  { %p644_p1 = scmp.ne.s32.totalorder %s758_s4, %s643_s6  ;;  %p647_p2 = scmp.lt.u32.totalorder %s643_s6, %s758_s4 }
 0x2fe   :  { %p649_p3 = pnand %p647_p2, %p644_p1 }
 0x300   :  { %652 = shalt.err (!%p649_p3)
}
 0x301   :  { %368 = dma.vmem_to_hbm [thread:$0]  %s366_s26, 128, %s758_s4, [#allocation4]  }
 0x302   :  { %657 = dma.done.wait [#allocation4], 128  }
 0x303   :  { %658 = vsyncadd [#allocation4], 4294967168 }
 0x304   :  { %372 = vsyncpa [#allocation3], 1 }
 0x305   :  { %373 = vsyncpa [#allocation6], 1 }
 0x306   :  { %374 = vsyncpa [#allocation4], 1 }

</bundles_post_ra>
